<compile_context>
chip_gen: v6e
topology: v6e:2x2x1
jax: 0.10.0
libtpu: 0.0.40
codegen_flags: <defaults>
</compile_context>

<pallas_src>
import functools

import jax
import jax.numpy as jnp
from jax.experimental import pallas as pl
from jax.experimental.pallas import tpu as pltpu


def _rdrop_kernel(l1_ref, l2_ref, gt_ref, wgt_ref, out_ref, acc_ref, *, alpha, inv_n):
    """Processes one (TN, C) tile of rows; accumulates the sum of per-row losses."""
    i = pl.program_id(0)

    @pl.when(i == 0)
    def _init():
        acc_ref[...] = jnp.zeros_like(acc_ref)

    l1 = l1_ref[...].astype(jnp.float32)          # (TN, C)
    l2 = l2_ref[...].astype(jnp.float32)          # (TN, C)
    gt = gt_ref[...]                              # (TN, 1) int32
    w_gt = wgt_ref[...].astype(jnp.float32)       # (TN, 1) = weight[gt] (0 on pad rows)
    tn, c = l1.shape

    def softmax_stats(x):
        # One exp pass reused for both log_softmax and softmax.
        m = jnp.max(x, axis=-1, keepdims=True)
        s = x - m
        e = jnp.exp(s)
        se = jnp.sum(e, axis=-1, keepdims=True)
        lp = s - jnp.log(se)                      # log_softmax
        p = e * pl.reciprocal(se, approx=True)    # softmax (EUP vrcp)
        return lp, p

    lp1, p1 = softmax_stats(l1)
    lp2, p2 = softmax_stats(l2)

    # one-hot(gt) built with iota/compare (no in-kernel gather).
    iota = jax.lax.broadcasted_iota(jnp.int32, (tn, c), 1)
    onehot = (iota == gt).astype(jnp.float32)

    # Fused weighted CE: ce1 + ce2 = -w[gt] * sum_c onehot * (lp1 + lp2)
    ce_sum = -w_gt * jnp.sum(onehot * (lp1 + lp2), axis=-1, keepdims=True)
    # Fused symmetric KL: kl1 + kl2 = sum_c (p2 - p1) * (lp2 - lp1)
    kl_sum = jnp.sum((p2 - p1) * (lp2 - lp1), axis=-1, keepdims=True)

    per_row = 0.5 * (ce_sum + alpha * kl_sum)     # (TN, 1); padded rows are exactly 0
    acc_ref[...] += jnp.sum(per_row, axis=0, keepdims=True)

    @pl.when(i == pl.num_programs(0) - 1)
    def _finalize():
        out_ref[...] = acc_ref[...] * inv_n


def _round_up(x, m):
    return (x + m - 1) // m * m


def _pick_block_n(n, c, itemsize):
    # Keep 2 inputs x 2 pipeline buffers x (TN*C*itemsize) comfortably under the
    # default scoped VMEM limits (16 MiB v5e / 32 MiB v6e,v7x): <= 4 MiB per buffer.
    budget = 4 * 1024 * 1024
    tn = budget // max(1, c * itemsize)
    tn = max(8, min(tn, 512))
    tn = (tn // 8) * 8
    tn = min(tn, _round_up(n, 8))
    return max(tn, 8)


def rdrop_loss(logits1, logits2, gt, weight, alpha=5.0, block_n=None):
    """logits1, logits2: (N, C); gt: (N,) int; weight: (C,) float. Returns scalar loss."""
    n, c = logits1.shape
    itemsize = jnp.dtype(logits1.dtype).itemsize

    if block_n is None:
        block_n = _pick_block_n(n, c, itemsize)
    block_n = max(8, (block_n // 8) * 8)

    # Per-class weight gather done once in XLA; kernel only sees w[gt] per row.
    w_gt = weight.astype(jnp.float32)[gt].reshape(n, 1)
    gt2d = gt.astype(jnp.int32).reshape(n, 1)

    n_pad = _round_up(n, block_n)
    pad = n_pad - n
    if pad:
        logits1 = jnp.pad(logits1, ((0, pad), (0, 0)))
        logits2 = jnp.pad(logits2, ((0, pad), (0, 0)))
        gt2d = jnp.pad(gt2d, ((0, pad), (0, 0)))
        w_gt = jnp.pad(w_gt, ((0, pad), (0, 0)))

    grid = (n_pad // block_n,)
    kernel = functools.partial(_rdrop_kernel, alpha=float(alpha), inv_n=1.0 / float(n))

    cost = pl.CostEstimate(
        flops=int(24 * n_pad * c),
        transcendentals=int(2 * n_pad * c + 4 * n_pad),
        bytes_accessed=int(2 * n_pad * c * itemsize + 8 * n_pad + 4),
    )

    out = pl.pallas_call(
        kernel,
        out_shape=jax.ShapeDtypeStruct((1, 1), jnp.float32),
        grid_spec=pltpu.PrefetchScalarGridSpec(
            num_scalar_prefetch=0,
            grid=grid,
            in_specs=[
                pl.BlockSpec((block_n, c), lambda i: (i, 0)),   # logits1 tile
                pl.BlockSpec((block_n, c), lambda i: (i, 0)),   # logits2 tile
                pl.BlockSpec((block_n, 1), lambda i: (i, 0)),   # gt tile
                pl.BlockSpec((block_n, 1), lambda i: (i, 0)),   # weight[gt] tile
            ],
            out_specs=pl.BlockSpec((1, 1), lambda i: (0, 0)),   # resident accumulator out
            scratch_shapes=[pltpu.VMEM((1, 1), jnp.float32)],
        ),
        compiler_params=pltpu.CompilerParams(
            dimension_semantics=("arbitrary",),
            vmem_limit_bytes=32 * 1024 * 1024,
        ),
        cost_estimate=cost,
    )(logits1, logits2, gt2d, w_gt)
    return out[0, 0]


def _rdrop_loss_ref(logits1, logits2, gt, weight, alpha=5.0):
    """Plain-JAX reference mirroring the PyTorch forward."""
    lp1 = jax.nn.log_softmax(logits1.astype(jnp.float32), axis=-1)
    lp2 = jax.nn.log_softmax(logits2.astype(jnp.float32), axis=-1)
    p1, p2 = jnp.exp(lp1), jnp.exp(lp2)
    onehot = jax.nn.one_hot(gt, logits1.shape[-1], dtype=jnp.float32)
    w_gt = weight[gt]
    ce1 = -w_gt * jnp.sum(onehot * lp1, axis=-1)
    ce2 = -w_gt * jnp.sum(onehot * lp2, axis=-1)
    ce = (ce1 + ce2) / 2.0
    kl1 = jnp.sum(p2 * (lp2 - lp1), axis=-1)
    kl2 = jnp.sum(p1 * (lp1 - lp2), axis=-1)
    kl = (kl1 + kl2) / 2.0
    return jnp.mean(ce + alpha * kl)


if __name__ == "__main__":
    N, C = 20, 16          # non-multiple of the block so padding/masking path is exercised
    alpha = 5.0

    key = jax.random.PRNGKey(0)
    k1, k2, k3 = jax.random.split(key, 3)
    logits1 = jax.random.normal(k1, (N, C), dtype=jnp.float32)
    logits2 = jax.random.normal(k2, (N, C), dtype=jnp.float32)
    gt = jax.random.randint(k3, (N,), 0, C, dtype=jnp.int32)
    weight = jnp.linspace(0.5, 1.5, C, dtype=jnp.float32)

    # block_n=8 forces a 3-step grid (with a padded last tile) at this small size.
    loss = rdrop_loss(logits1, logits2, gt, weight, alpha, block_n=8)
    loss = jax.block_until_ready(loss)

    ref = _rdrop_loss_ref(logits1, logits2, gt, weight, alpha)
    # approx reciprocal in the softmax denominator -> ~1e-4 relative error budget
    assert jnp.allclose(loss, ref, rtol=1e-3, atol=1e-3), (loss, ref)

    print("KERNEL_OK")
</pallas_src>

<mosaic_0001>
module attributes {stable_mosaic.version = 11 : i64} {
  func.func @_rdrop_kernel(%arg0: i32, %arg1: memref<8x16xf32, #tpu.memory_space<vmem>>, %arg2: memref<8x16xf32, #tpu.memory_space<vmem>>, %arg3: memref<8x1xi32, #tpu.memory_space<vmem>>, %arg4: memref<8x1xf32, #tpu.memory_space<vmem>>, %arg5: memref<1x1xf32, #tpu.memory_space<vmem>>, %arg6: memref<1x1xf32, #tpu.memory_space<vmem>>) attributes {dimension_semantics = [#tpu.dimension_semantics<arbitrary>], iteration_bounds = array<i64: 3>, scalar_prefetch = 0 : i64, scratch_operands = 1 : i64, tpu.core_type = #tpu.core_type<tc>, window_params = [{transform_indices = @transform_0, window_bounds = array<i64: 8, 16>}, {transform_indices = @transform_1, window_bounds = array<i64: 8, 16>}, {transform_indices = @transform_2, window_bounds = array<i64: 8, 1>}, {transform_indices = @transform_3, window_bounds = array<i64: 8, 1>}, {pipeline_mode = #tpu.pipeline_mode<synchronous>, transform_indices = @transform_4, window_bounds = array<i64: 1, 1>}]} {
    %c0_i32 = arith.constant 0 : i32
    %0 = arith.cmpi eq, %arg0, %c0_i32 : i32
    %1 = arith.extui %0 : i1 to i32
    %c0_i32_0 = arith.constant 0 : i32
    %2 = arith.cmpi ne, %1, %c0_i32_0 : i32
    scf.if %2 {
      %cst_22 = arith.constant 0.000000e+00 : f32
      %63 = vector.broadcast %cst_22 : f32 to vector<1x1xf32>
      %c0_23 = arith.constant 0 : index
      %c0_24 = arith.constant 0 : index
      %64 = vector.load %arg6[%c0_23, %c0_24] : memref<1x1xf32, #tpu.memory_space<vmem>>, vector<1x1xf32>
      tpu.vector_store %arg6[%c0_23, %c0_24], %63 {strides = array<i32>} : memref<1x1xf32, #tpu.memory_space<vmem>>, vector<1x1xf32>,
    } else {
    }
    %c0 = arith.constant 0 : index
    %c0_1 = arith.constant 0 : index
    %3 = vector.load %arg1[%c0, %c0_1] : memref<8x16xf32, #tpu.memory_space<vmem>>, vector<8x16xf32>
    %c0_2 = arith.constant 0 : index
    %c0_3 = arith.constant 0 : index
    %4 = vector.load %arg2[%c0_2, %c0_3] : memref<8x16xf32, #tpu.memory_space<vmem>>, vector<8x16xf32>
    %c0_4 = arith.constant 0 : index
    %c0_5 = arith.constant 0 : index
    %5 = vector.load %arg3[%c0_4, %c0_5] : memref<8x1xi32, #tpu.memory_space<vmem>>, vector<8x1xi32>
    %c0_6 = arith.constant 0 : index
    %c0_7 = arith.constant 0 : index
    %6 = vector.load %arg4[%c0_6, %c0_7] : memref<8x1xf32, #tpu.memory_space<vmem>>, vector<8x1xf32>
    %cst = arith.constant dense<0xFF800000> : vector<8xf32>
    %7 = vector.multi_reduction <maximumf>, %3, %cst [1] : vector<8x16xf32> to vector<8xf32>
    %8 = vector.shape_cast %7 : vector<8xf32> to vector<8x1xf32>
    %9 = vector.broadcast %8 : vector<8x1xf32> to vector<8x16xf32>
    %10 = arith.subf %3, %9 : vector<8x16xf32>
    %11 = math.exp %10 : vector<8x16xf32>
    %cst_8 = arith.constant dense<0.000000e+00> : vector<8xf32>
    %12 = vector.multi_reduction <add>, %11, %cst_8 [1] : vector<8x16xf32> to vector<8xf32>
    %13 = vector.shape_cast %12 : vector<8xf32> to vector<8x1xf32>
    %14 = math.log %13 : vector<8x1xf32>
    %15 = vector.broadcast %14 : vector<8x1xf32> to vector<8x16xf32>
    %16 = arith.subf %10, %15 : vector<8x16xf32>
    %17 = tpu.reciprocal %13 {approx = true} : vector<8x1xf32> -> vector<8x1xf32>
    %18 = vector.broadcast %17 : vector<8x1xf32> to vector<8x16xf32>
    %19 = arith.mulf %11, %18 : vector<8x16xf32>
    %cst_9 = arith.constant dense<0xFF800000> : vector<8xf32>
    %20 = vector.multi_reduction <maximumf>, %4, %cst_9 [1] : vector<8x16xf32> to vector<8xf32>
    %21 = vector.shape_cast %20 : vector<8xf32> to vector<8x1xf32>
    %22 = vector.broadcast %21 : vector<8x1xf32> to vector<8x16xf32>
    %23 = arith.subf %4, %22 : vector<8x16xf32>
    %24 = math.exp %23 : vector<8x16xf32>
    %cst_10 = arith.constant dense<0.000000e+00> : vector<8xf32>
    %25 = vector.multi_reduction <add>, %24, %cst_10 [1] : vector<8x16xf32> to vector<8xf32>
    %26 = vector.shape_cast %25 : vector<8xf32> to vector<8x1xf32>
    %27 = math.log %26 : vector<8x1xf32>
    %28 = vector.broadcast %27 : vector<8x1xf32> to vector<8x16xf32>
    %29 = arith.subf %23, %28 : vector<8x16xf32>
    %30 = tpu.reciprocal %26 {approx = true} : vector<8x1xf32> -> vector<8x1xf32>
    %31 = vector.broadcast %30 : vector<8x1xf32> to vector<8x16xf32>
    %32 = arith.mulf %24, %31 : vector<8x16xf32>
    %33 = tpu.iota {dimensions = array<i32: 1>} : vector<8x16xi32>
    %34 = vector.broadcast %5 : vector<8x1xi32> to vector<8x16xi32>
    %35 = arith.cmpi eq, %33, %34 : vector<8x16xi32>
    %36 = arith.extui %35 : vector<8x16xi1> to vector<8x16xi32>
    %37 = arith.sitofp %36 : vector<8x16xi32> to vector<8x16xf32>
    %cst_11 = arith.constant 0.000000e+00 : f32
    %38 = vector.broadcast %cst_11 : f32 to vector<8x1xf32>
    %39 = arith.subf %38, %6 : vector<8x1xf32>
    %40 = arith.addf %16, %29 : vector<8x16xf32>
    %41 = arith.mulf %37, %40 : vector<8x16xf32>
    %cst_12 = arith.constant dense<0.000000e+00> : vector<8xf32>
    %42 = vector.multi_reduction <add>, %41, %cst_12 [1] : vector<8x16xf32> to vector<8xf32>
    %43 = vector.shape_cast %42 : vector<8xf32> to vector<8x1xf32>
    %44 = arith.mulf %39, %43 : vector<8x1xf32>
    %45 = arith.subf %32, %19 : vector<8x16xf32>
    %46 = arith.subf %29, %16 : vector<8x16xf32>
    %47 = arith.mulf %45, %46 : vector<8x16xf32>
    %cst_13 = arith.constant dense<0.000000e+00> : vector<8xf32>
    %48 = vector.multi_reduction <add>, %47, %cst_13 [1] : vector<8x16xf32> to vector<8xf32>
    %49 = vector.shape_cast %48 : vector<8xf32> to vector<8x1xf32>
    %cst_14 = arith.constant 5.000000e+00 : f32
    %50 = vector.broadcast %cst_14 : f32 to vector<8x1xf32>
    %51 = arith.mulf %50, %49 : vector<8x1xf32>
    %52 = arith.addf %44, %51 : vector<8x1xf32>
    %cst_15 = arith.constant 5.000000e-01 : f32
    %53 = vector.broadcast %cst_15 : f32 to vector<8x1xf32>
    %54 = arith.mulf %53, %52 : vector<8x1xf32>
    %c0_16 = arith.constant 0 : index
    %c0_17 = arith.constant 0 : index
    %55 = vector.load %arg6[%c0_16, %c0_17] : memref<1x1xf32, #tpu.memory_space<vmem>>, vector<1x1xf32>
    %cst_18 = arith.constant dense<0.000000e+00> : vector<1xf32>
    %56 = vector.multi_reduction <add>, %54, %cst_18 [0] : vector<8x1xf32> to vector<1xf32>
    %57 = vector.shape_cast %56 : vector<1xf32> to vector<1x1xf32>
    %58 = arith.addf %55, %57 : vector<1x1xf32>
    %c0_19 = arith.constant 0 : index
    %c0_20 = arith.constant 0 : index
    %59 = vector.load %arg6[%c0_19, %c0_20] : memref<1x1xf32, #tpu.memory_space<vmem>>, vector<1x1xf32>
    tpu.vector_store %arg6[%c0_19, %c0_20], %58 {strides = array<i32>} : memref<1x1xf32, #tpu.memory_space<vmem>>, vector<1x1xf32>,
    %c2_i32 = arith.constant 2 : i32
    %60 = arith.cmpi eq, %arg0, %c2_i32 : i32
    %61 = arith.extui %60 : i1 to i32
    %c0_i32_21 = arith.constant 0 : i32
    %62 = arith.cmpi ne, %61, %c0_i32_21 : i32
    scf.if %62 {
      %c0_22 = arith.constant 0 : index
      %c0_23 = arith.constant 0 : index
      %63 = vector.load %arg6[%c0_22, %c0_23] : memref<1x1xf32, #tpu.memory_space<vmem>>, vector<1x1xf32>
      %cst_24 = arith.constant 5.000000e-02 : f32
      %64 = vector.broadcast %cst_24 : f32 to vector<1x1xf32>
      %65 = arith.mulf %63, %64 : vector<1x1xf32>
      %c0_25 = arith.constant 0 : index
      %c0_26 = arith.constant 0 : index
      %66 = vector.load %arg5[%c0_25, %c0_26] : memref<1x1xf32, #tpu.memory_space<vmem>>, vector<1x1xf32>
      tpu.vector_store %arg5[%c0_25, %c0_26], %65 {strides = array<i32>} : memref<1x1xf32, #tpu.memory_space<vmem>>, vector<1x1xf32>,
    } else {
    }
    return
  }
  func.func @transform_0(%arg0: i32) -> (i32, i32) {
    %c0_i32 = arith.constant 0 : i32
    %c0_i32_0 = arith.constant 0 : i32
    return %arg0, %c0_i32 : i32, i32
  }
  func.func @transform_1(%arg0: i32) -> (i32, i32) {
    %c0_i32 = arith.constant 0 : i32
    %c0_i32_0 = arith.constant 0 : i32
    return %arg0, %c0_i32 : i32, i32
  }
  func.func @transform_2(%arg0: i32) -> (i32, i32) {
    %c0_i32 = arith.constant 0 : i32
    %c0_i32_0 = arith.constant 0 : i32
    return %arg0, %c0_i32 : i32, i32
  }
  func.func @transform_3(%arg0: i32) -> (i32, i32) {
    %c0_i32 = arith.constant 0 : i32
    %c0_i32_0 = arith.constant 0 : i32
    return %arg0, %c0_i32 : i32, i32
  }
  func.func @transform_4(%arg0: i32) -> (i32, i32) {
    %c0_i32 = arith.constant 0 : i32
    %c0_i32_0 = arith.constant 0 : i32
    %c0_i32_1 = arith.constant 0 : i32
    return %c0_i32, %c0_i32_0 : i32, i32
  }
}

</mosaic_0001>

<bundles_post_ra>
// kernel: tpu_custom_call.1
= control target key start
LH: loop header
LB: loop body
LE: loop exit
PB: predicated region body
PF: predicated region fallthrough
CT: control target
= control target key end

     0   :  { %9 = vsyncpa [#allocation4], 0  ;;  %s507_s15 = smov 0   ;;  %s565_s0 = inlined_call_operand.vmem [shape: f32[24,16], index: 0, kind: input, shape index: {}]   ;;  %s566_s1 = inlined_call_operand.vmem [shape: f32[24,16], index: 1, kind: input, shape index: {}]   ;;  %s567_s2 = inlined_call_operand.vmem [shape: s32[24,1], index: 2, kind: input, shape index: {}]   ;;  %s568_s3 = inlined_call_operand.vmem [shape: f32[24,1], index: 3, kind: input, shape index: {}]   ;;  %s569_s4 = inlined_call_operand.hbm [shape: f32[1,1], index: 4, kind: output, shape index: {}]  }
   0x1 LB: > { %s513_s16 = sadd.s32 4294967295, %s476_s15   ;;  %p399_p0 = scmp.ge.s32.totalorder %s476_s15, 1  ;;  %s476_s15 = sphi %s507_s15, %s15_s15  }
   0x2   : > { %p184_p1 = scmp.lt.s32.totalorder %s476_s15, 4 }
   0x4   : > { %p185_p2 = pnand %p399_p0, %p184_p1 }
   0x5   : > { %p216_p3 = scmp.lt.s32.totalorder (!%p185_p2), %s513_s16, 2  ;;  %p404_p4 = scmp.ne.s32.totalorder (!%p185_p2), %s513_s16, 0 }
   0x6   : > { %188 = sbr.rel (%p185_p2) target bundleno = 532 (0x214), region = 36 }
   0xb   : > { %s217_s17 = scalar_select %p216_p3, %s513_s16, 2 }
   0xc   : > { %235 = sbr.rel (%p404_p4) target bundleno = 19 (0x13), region = 40 }
   0xd   : > { %s519_s18 = sshll.u32 %s217_s17, 3 }
   0xe   : > { %s219_s21 = scalar_lea.vmem %s565_s0, %s519_s18  ;;  %s223_s24 = scalar_lea.vmem %s566_s1, %s519_s18 }
   0xf   : > { %s227_s27 = scalar_lea.vmem %s567_s2, %s519_s18  ;;  %s231_s30 = scalar_lea.vmem %s568_s3, %s519_s18 }
  0x11   : > { %vm236_vm0 = vcmask 0   ;;  %v478_v0 = vmov 0.0  }
  0x12   : > { %237 = vst.msk [vmem:[#allocation2] sm:$0x1] %vm236_vm0, %v478_v0 }
  0x13 PF: > { %v238_v1 = vld [vmem:[%s219_s21] sm:$0xff]  ;;  %vm242_vm1 = vcmask 130048   ;;  %v479_v6 = vmov 0   ;;  %v271_v19 = vlaneseq  ;;  %v480_v31 = vmov 0.0   ;;  %p406_p5 = scmp.ne.s32.totalorder %s513_s16, 2 }
  0x14   : > { %v239_v2 = vld [vmem:[%s223_s24] sm:$0xff]  ;;  %v243_v3 = vsel %vm242_vm1, %v238_v1, -inf  ;;  %429 = vset.pattern.permute.xlu0 %v479_v6  ;;  %vm296_vm3 = vcmask 7168   ;;  %vm305_vm4 = vcmask 0  }
  0x15   : > { %244 = vmax.xlane.f32.xlu0 %v243_v3  ;;  %v257_v4 = vsel %vm242_vm1, %v239_v2, -inf  ;;  %v240_v5 = vld [vmem:[%s227_s27] sm:$0xff]  ;;  %v272_v21 = vand.u32 127, %v271_v19 }
  0x16   : > { %v241_v41 = vld [vmem:[%s231_s30] sm:$0xff] }
  0x17   : > { %v279_v43 = vsub.f32 0.0, %v241_v41 }
  0x19   : > { %258 = vmax.xlane.f32.xlu0 %v257_v4  ;;  %v295_v55 = vld [vmem:[#allocation2] sm:$0x1] }
  0x2f   : > { %274 = vperm.xlu0 %429, %v240_v5  }
  0x9e   : > { %v245_v7 = vpop.xlane.xlu0 %244 }
  0x9f   : > { %v246_v8 = vsub.f32 %v238_v1, %v245_v7 }
  0xa1   : > { %v247_v9 = vmul.f32 1.442695, %v246_v8 }
  0xa2   : > { %v259_v10 = vpop.xlane.xlu0 %258 }
  0xa3   : > { %430 = vpow2.f32 %v247_v9  ;;  %v260_v11 = vsub.f32 %v239_v2, %v259_v10 }
  0xa5   : > { %v261_v12 = vmul.f32 1.442695, %v260_v11 }
  0xa7   : > { %432 = vpow2.f32 %v261_v12 }
  0xaa   : > { %v275_v22 = vpop.permute.xlu0 %274 }
  0xab   : > { %vm276_vm2 = vcmp.eq.s32.totalorder %v272_v21, %v275_v22 }
  0xac   : > { %v405_v32 = vsel %vm276_vm2, 1.0, %v480_v31 }
  0xb0   : > { %v431_v13 = vpop.eup %430 }
  0xb1   : > { %v249_v14 = vsel %vm242_vm1, %v431_v13, 0.0 }
  0xb2   : > { %250 = vadd.xlane.f32.xlu1 %v249_v14 }
  0xb4   : > { %v433_v15 = vpop.eup %432 }
  0xb5   : > { %v263_v16 = vsel %vm242_vm1, %v433_v15, 0.0 }
  0xb6   : > { %264 = vadd.xlane.f32.xlu1 %v263_v16 }
 0x13b   : > { %v251_v17 = vpop.xlane.xlu1 %250 }
 0x13c   : > { %434 = vlog2.f32 %v251_v17 }
 0x13f   : > { %v265_v18 = vpop.xlane.xlu1 %264 }
 0x140   : > { %436 = vlog2.f32 %v265_v18 }
 0x141   : > { %438 = vrcp.f32 %v265_v18 }
 0x142   : > { %440 = vrcp.f32 %v251_v17 }
 0x149   : > { %v435_v20 = vpop.eup %434 }
 0x14a   : > { %v253_v23 = vmul.f32 0.6931472, %v435_v20 }
 0x14c   : > { %v254_v28 = vsub.f32 %v246_v8, %v253_v23 }
 0x14d   : > { %v437_v24 = vpop.eup %436 }
 0x14e   : > { %v439_v25 = vpop.eup %438  ;;  %v267_v26 = vmul.f32 0.6931472, %v437_v24 }
 0x14f   : > { %v441_v27 = vpop.eup %440  ;;  %v270_v30 = vmul.f32 %v439_v25, %v433_v15 }
 0x150   : > { %v268_v29 = vsub.f32 %v260_v11, %v267_v26  ;;  %v256_v34 = vmul.f32 %v441_v27, %v431_v13 }
 0x152   : > { %v280_v33 = vadd.f32 %v268_v29, %v254_v28  ;;  %v287_v35 = vsub.f32 %v268_v29, %v254_v28  ;;  %v286_v37 = vsub.f32 %v270_v30, %v256_v34 }
 0x154   : > { %v281_v36 = vmul.f32 %v405_v32, %v280_v33  ;;  %v288_v39 = vmul.f32 %v287_v35, %v286_v37 }
 0x156   : > { %v282_v38 = vsel %vm242_vm1, %v281_v36, 0.0  ;;  %v289_v40 = vsel %vm242_vm1, %v288_v39, 0.0 }
 0x157   : > { %283 = vadd.xlane.f32.xlu1 %v282_v38 }
 0x15b   : > { %290 = vadd.xlane.f32.xlu1 %v289_v40 }
 0x1e0   : > { %v284_v42 = vpop.xlane.xlu1 %283 }
 0x1e1   : > { %v285_v45 = vmul.f32 %v284_v42, %v279_v43 }
 0x1e4   : > { %v291_v44 = vpop.xlane.xlu1 %290 }
 0x1e5   : > { %v292_v46 = vmul.f32 5.0, %v291_v44 }
 0x1e7   : > { %v293_v47 = vadd.f32 %v292_v46, %v285_v45 }
 0x1e9   : > { %v294_v48 = vmul.f32 0.5, %v293_v47 }
 0x1eb   : > { %v297_v49 = vsel %vm296_vm3, %v294_v48, 0.0 }
 0x1ec   : > { %v298_v50 = vrot.slane %v297_v49, 4 }
 0x1ee   : > { %v299_v51 = vadd.f32 %v298_v50, %v297_v49 }
 0x1f0   : > { %v300_v52 = vrot.slane %v299_v51, 2 }
 0x1f2   : > { %v301_v53 = vadd.f32 %v300_v52, %v299_v51 }
 0x1f4   : > { %v302_v54 = vrot.slane %v301_v53, 1 }
 0x1f6   : > { %v303_v56 = vadd.f32 %v302_v54, %v301_v53  ;;  %310 = sbr.rel (%p406_p5) target bundleno = 517 (0x205), region = 44 }
 0x1f8   : > { %v304_v57 = vadd.f32 %v303_v56, %v295_v55 }
 0x1fa   : > { %306 = vst.msk [vmem:[#allocation2] sm:$0x1] %vm305_vm4, %v304_v57 }
 0x201   : > { %v311_v58 = vld [vmem:[#allocation2] sm:$0x1] }
 0x202   : > { %v312_v59 = vmul.f32 0.05, %v311_v58 }
 0x204   : > { %313 = vst.msk [vmem:[#allocation3] sm:$0x1] %vm305_vm4, %v312_v59 }
 0x205 PF: > { %p415_p6 = scmp.eq.s32.totalorder %s513_s16, 2  ;;  %s481_s7 = smov [#allocation3]  }
 0x206   : > { %s321_s8 = sshll.u32 %s481_s7, 4  ;;  %s322_s8 = int_to_ptr.vmem [resolvable:$true] %s321_s8 }
 0x207   : > { %s442_s9 = scalar_lea.vmem %s322_s8, 16  ;;  %s448_s10 = scalar_lea.vmem %s322_s8, 32 }
 0x208   : > { %p443_p7 = scmp.ne.s32.totalorder %s322_s8, %s442_s9  ;;  %p449_p10 = scmp.lt.s32.totalorder %s322_s8, %s322_s8 }
 0x209   : > { %p450_p11 = scmp.lt.s32.totalorder %s448_s10, %s442_s9 }
 0x20a   : > { %p444_p8 = pnand %p443_p7, %p415_p6 }
 0x20b   : > { %p451_p12 = por %p450_p11, %p449_p10 }
 0x20c   : > { %p445_p9 = pneg %p444_p8 }
 0x20e   : > { %p452_p13 = pnand %p451_p12, %p445_p9 }
 0x210   : > { %455 = shalt.err (!%p452_p13)
}
 0x211   : > { %412 = dma.vmem_to_hbm [thread:$0]  (%p415_p6), %s322_s8, 16, %s569_s4, [#allocation4]  }
 0x212   : > { %471 = dma.done.wait (%p415_p6), [#allocation4], 16  }
 0x213   : > { %473 = vsyncadd (%p415_p6), [#allocation4], 4294967280 }
 0x214 PF: > { %s15_s15 = sadd.s32 1, %s476_s15  }
 0x215   : > { %p12_p0 = scmp.ge.s32.totalorder %s15_s15, 5  }
 0x217   :  { %14 = sbr.rel (!%p12_p0) target bundleno = 1 (0x1), region = 80 }
 0x21c   :  { %334 = vsyncpa [#allocation4], 1 }
 0x21d   :  { %336 = vsyncpa [#allocation4 + $0x1], 1 }

</bundles_post_ra>
